<compile_context>
chip_gen: v7x
topology: tpu7x:2x2x1
jax: 0.10.0
libtpu: 0.0.40
codegen_flags: <defaults>
</compile_context>

<pallas_src>
import functools

import numpy as np
import jax
import jax.numpy as jnp
from jax.experimental import pallas as pl
from jax.experimental.pallas import tpu as pltpu


# ---------------------------------------------------------------------------
# Pallas kernel
# ---------------------------------------------------------------------------
def _combined_embedding_kernel(
    n_mol,
    d_z_ref, tez_ref, psi_ref, molid_ref,
    m_w_ref, w_all_ref, vecs_ref,
    x0_ref,
):
    f32 = jnp.float32
    n_atoms, feat_dim = tez_ref.shape
    inv_sqrt_f = 1.0 / (float(feat_dim) ** 0.5)

    # ---- packed small parameters (one [11, F] tile) -----------------------
    vecs = vecs_ref[...]
    lin_b = vecs[0:1]
    k_plus, k_minus = vecs[1:2], vecs[2:3]
    v_plus, v_minus = vecs[3:4], vecs[4:5]
    a1, b1 = vecs[5:6], vecs[6:7]
    a2, b2 = vecs[7:8], vecs[8:9]
    a3, b3 = vecs[9:10], vecs[10:11]

    # ---- packed [F, F] weights (one [4F, F] tile) --------------------------
    w_all = w_all_ref[...]
    lin_w = w_all[0 * feat_dim:1 * feat_dim]
    p1_w = w_all[1 * feat_dim:2 * feat_dim]
    p2_w = w_all[2 * feat_dim:3 * feat_dim]
    out_w = w_all[3 * feat_dim:4 * feat_dim]

    # ---- NuclearEmbedding + shared query (hoisted: identical for q/s) -----
    e_z = jnp.dot(d_z_ref[...], m_w_ref[...], preferred_element_type=f32) + tez_ref[...]
    q = jnp.dot(e_z, lin_w, preferred_element_type=f32) + lin_b              # [N, F]

    # q . k_plus and q . k_minus are shared between charge and spin branches
    qk_plus = jnp.sum(q * k_plus, axis=-1, keepdims=True) * inv_sqrt_f       # [N, 1]
    qk_minus = jnp.sum(q * k_minus, axis=-1, keepdims=True) * inv_sqrt_f     # [N, 1]

    # ---- segment mask from per-atom molecule id (O(N * n_mol)) ------------
    mol_iota = jax.lax.broadcasted_iota(jnp.int32, (n_atoms, n_mol), 1)
    seg_mask = (molid_ref[...] == mol_iota).astype(f32)                      # [N, n_mol]

    psi = psi_ref[...]                                                       # [N, 2] charge|spin

    def softplus(x):  # numerically stable log(1 + exp(x))
        return jnp.maximum(x, 0.0) + jnp.log(1.0 + jnp.exp(-jnp.abs(x)))

    def branch_av(col):
        psi_c = psi[:, col:col + 1]                                          # [N, 1]
        pos = (psi_c >= 0.0).astype(f32)                                     # [N, 1]
        arg = pos * qk_plus + (1.0 - pos) * qk_minus                         # [N, 1]
        num = softplus(arg)                                                  # [N, 1]
        per_mol = jnp.sum(seg_mask * num, axis=0, keepdims=True)             # [1, n_mol]
        denom = jnp.sum(seg_mask * per_mol, axis=1, keepdims=True)           # [N, 1]
        a_i = psi_c * num / denom                                            # [N, 1]
        v_at = pos * v_plus + (1.0 - pos) * v_minus                          # [N, F]
        return a_i * v_at                                                    # [N, F]

    # ---- fuse charge & spin branches through the ResidualMLP ---------------
    av = jnp.concatenate([branch_av(0), branch_av(1)], axis=0)               # [2N, F]

    def swish(x, alpha, beta):
        # learnable swish: alpha * x * sigmoid(beta * x); f32-safe naive sigmoid
        return alpha * x * (1.0 / (1.0 + jnp.exp(-beta * x)))

    h = jnp.dot(swish(av, a1, b1), p1_w, preferred_element_type=f32)
    h = jnp.dot(swish(h, a2, b2), p2_w, preferred_element_type=f32)
    r = av + h
    e_psi = jnp.dot(swish(r, a3, b3), out_w, preferred_element_type=f32)     # [2N, F]

    x0_ref[...] = e_z + e_psi[:n_atoms] + e_psi[n_atoms:]


def _full_spec(shape):
    nd = len(shape)
    return pl.BlockSpec(shape, lambda i, nd=nd: (0,) * nd)


# ---------------------------------------------------------------------------
# Host-side wrapper (glue: gathers, per-molecule -> per-atom expansion, packing)
# ---------------------------------------------------------------------------
def combined_embedding_forward(params, charge, spin, z, num_atoms):
    feat_dim = params["z_embed"].shape[1]
    num_atoms = np.asarray(num_atoms, dtype=np.int64)
    n_mol = int(num_atoms.shape[0])
    n_atoms = int(num_atoms.sum())

    atom_mol = np.repeat(np.arange(n_mol), num_atoms).astype(np.int32)       # [N]

    z = jnp.asarray(z, jnp.int32)
    d_z = params["elec_config"][z].astype(jnp.float32)                       # [N, 20]
    tez = params["z_embed"][z].astype(jnp.float32)                           # [N, F]

    charge = jnp.asarray(charge, jnp.float32)
    spin = jnp.asarray(spin, jnp.float32)
    psi = jnp.stack([charge[atom_mol], spin[atom_mol]], axis=1)              # [N, 2]
    molid = jnp.asarray(atom_mol, jnp.int32)[:, None]                        # [N, 1]

    # NOTE: the reference module uses charge_embedding for BOTH charge and spin
    # (spin_embedding is constructed but unused in forward) -> shared params.
    vecs = jnp.stack([
        params["lin_b"], params["k_plus"], params["k_minus"],
        params["v_plus"], params["v_minus"],
        params["a1"], params["b1"], params["a2"], params["b2"],
        params["a3"], params["b3"],
    ], axis=0).astype(jnp.float32)                                           # [11, F]

    w_all = jnp.concatenate(
        [params["lin_w"], params["p1_w"], params["p2_w"], params["out_w"]],
        axis=0).astype(jnp.float32)                                          # [4F, F]

    inputs = [d_z, tez, psi, molid, params["m_w"].astype(jnp.float32), w_all, vecs]

    kernel = functools.partial(_combined_embedding_kernel, n_mol)

    out = pl.pallas_call(
        kernel,
        out_shape=jax.ShapeDtypeStruct((n_atoms, feat_dim), jnp.float32),
        grid=(1,),
        in_specs=[_full_spec(tuple(x.shape)) for x in inputs],
        out_specs=_full_spec((n_atoms, feat_dim)),
        compiler_params=pltpu.CompilerParams(
            dimension_semantics=("arbitrary",)),
    )(*inputs)
    return out


# ---------------------------------------------------------------------------
# Pure-JAX reference (mirrors the PyTorch module math) for a correctness check
# ---------------------------------------------------------------------------
def reference_forward(params, charge, spin, z, num_atoms):
    feat_dim = params["z_embed"].shape[1]
    num_atoms = np.asarray(num_atoms, dtype=np.int64)
    atom_mol = np.repeat(np.arange(num_atoms.shape[0]), num_atoms)
    seg = jnp.asarray((atom_mol[:, None] == atom_mol[None, :]).astype(np.float32))

    z = jnp.asarray(z, jnp.int32)
    e_z = params["elec_config"][z] @ params["m_w"] + params["z_embed"][z]

    def swish(x, a, b):
        return a * x * (1.0 / (1.0 + jnp.exp(-b * x)))

    def electronic(psi):
        psi_at = jnp.asarray(psi, jnp.float32)[atom_mol][:, None]
        pos = psi_at >= 0.0
        k_at = jnp.where(pos, params["k_plus"][None, :], params["k_minus"][None, :])
        v_at = jnp.where(pos, params["v_plus"][None, :], params["v_minus"][None, :])
        q = e_z @ params["lin_w"] + params["lin_b"][None, :]
        arg = jnp.sum(q * k_at, axis=-1, keepdims=True) / (feat_dim ** 0.5)
        num = jnp.log(1.0 + jnp.exp(arg))
        denom = seg @ num
        av = (psi_at * num / denom) * v_at
        h = swish(av, params["a1"], params["b1"]) @ params["p1_w"]
        h = swish(h, params["a2"], params["b2"]) @ params["p2_w"]
        r = av + h
        return swish(r, params["a3"], params["b3"]) @ params["out_w"]

    return e_z + electronic(charge) + electronic(spin)


# ---------------------------------------------------------------------------
# Deterministic parameter init
# ---------------------------------------------------------------------------
def init_params(key, feat_dim, max_z):
    ks = jax.random.split(key, 16)
    scale = 0.1

    def rnd(k, shape):
        return (scale * jax.random.normal(k, shape)).astype(jnp.float32)

    # TODO(synk): ELEC_CONFIG (ground-state electron configuration table) is
    # external data not provided with the module; a deterministic synthetic
    # [max_z+1, 20] table is used instead.
    elec_config = jax.random.uniform(ks[0], (max_z + 1, 20), dtype=jnp.float32)

    z_embed = rnd(ks[1], (max_z, feat_dim))
    z_embed = z_embed.at[0].set(0.0)  # padding_idx=0

    params = {
        "elec_config": elec_config,
        "m_w": rnd(ks[2], (20, feat_dim)),          # NuclearEmbedding.m_mat
        "z_embed": z_embed,
        # ElectronicEmbedding (charge; reused for spin as in the reference code)
        "lin_w": rnd(ks[3], (feat_dim, feat_dim)),
        "lin_b": rnd(ks[4], (feat_dim,)),
        "k_plus": rnd(ks[5], (feat_dim,)),
        "k_minus": rnd(ks[6], (feat_dim,)),
        "v_plus": rnd(ks[7], (feat_dim,)),
        "v_minus": rnd(ks[8], (feat_dim,)),
        # ResidualMLP (bias=False): two PreActivation linears + final Dense
        "p1_w": rnd(ks[9], (feat_dim, feat_dim)),
        "p2_w": rnd(ks[10], (feat_dim, feat_dim)),
        "out_w": rnd(ks[11], (feat_dim, feat_dim)),
        # learnable-swish parameters (alpha=1.0, beta=1.702 at init)
        "a1": jnp.ones((feat_dim,), jnp.float32),
        "b1": jnp.full((feat_dim,), 1.702, jnp.float32),
        "a2": jnp.ones((feat_dim,), jnp.float32),
        "b2": jnp.full((feat_dim,), 1.702, jnp.float32),
        "a3": jnp.ones((feat_dim,), jnp.float32),
        "b3": jnp.full((feat_dim,), 1.702, jnp.float32),
    }
    return params


# ---------------------------------------------------------------------------
if __name__ == "__main__":
    key = jax.random.PRNGKey(0)
    feat_dim = 32
    max_z = 86

    num_atoms = np.array([5, 3], dtype=np.int32)          # 2 molecules, 8 atoms total
    n_atoms = int(num_atoms.sum())

    k_par, k_z = jax.random.split(key)
    params = init_params(k_par, feat_dim, max_z)

    z = jax.random.randint(k_z, (n_atoms,), 1, max_z, dtype=jnp.int32)
    charge = jnp.array([0.0, -1.0], dtype=jnp.float32)    # total charge per molecule
    spin = jnp.array([2.0, 0.0], dtype=jnp.float32)       # spin multiplicity proxy

    out = combined_embedding_forward(params, charge, spin, z, num_atoms)
    out = jax.block_until_ready(out)

    ref = reference_forward(params, charge, spin, z, num_atoms)
    ref = jax.block_until_ready(ref)

    assert out.shape == (n_atoms, feat_dim)
    assert np.allclose(np.asarray(out), np.asarray(ref), atol=1e-4, rtol=1e-4), (
        "Pallas kernel output does not match the pure-JAX reference"
    )
    print("KERNEL_OK")
</pallas_src>

<mosaic_0001>
module attributes {stable_mosaic.version = 11 : i64} {
  func.func @_combined_embedding_kernel(%arg0: i32, %arg1: memref<8x20xf32, #tpu.memory_space<vmem>>, %arg2: memref<8x32xf32, #tpu.memory_space<vmem>>, %arg3: memref<8x2xf32, #tpu.memory_space<vmem>>, %arg4: memref<8x1xi32, #tpu.memory_space<vmem>>, %arg5: memref<20x32xf32, #tpu.memory_space<vmem>>, %arg6: memref<128x32xf32, #tpu.memory_space<vmem>>, %arg7: memref<11x32xf32, #tpu.memory_space<vmem>>, %arg8: memref<8x32xf32, #tpu.memory_space<vmem>>) attributes {dimension_semantics = [#tpu.dimension_semantics<arbitrary>], iteration_bounds = array<i64: 1>, scalar_prefetch = 0 : i64, scratch_operands = 0 : i64, tpu.core_type = #tpu.core_type<tc>, window_params = [{pipeline_mode = #tpu.pipeline_mode<synchronous>, transform_indices = @transform_0, window_bounds = array<i64: 8, 20>}, {pipeline_mode = #tpu.pipeline_mode<synchronous>, transform_indices = @transform_1, window_bounds = array<i64: 8, 32>}, {pipeline_mode = #tpu.pipeline_mode<synchronous>, transform_indices = @transform_2, window_bounds = array<i64: 8, 2>}, {pipeline_mode = #tpu.pipeline_mode<synchronous>, transform_indices = @transform_3, window_bounds = array<i64: 8, 1>}, {pipeline_mode = #tpu.pipeline_mode<synchronous>, transform_indices = @transform_4, window_bounds = array<i64: 20, 32>}, {pipeline_mode = #tpu.pipeline_mode<synchronous>, transform_indices = @transform_5, window_bounds = array<i64: 128, 32>}, {pipeline_mode = #tpu.pipeline_mode<synchronous>, transform_indices = @transform_6, window_bounds = array<i64: 11, 32>}, {pipeline_mode = #tpu.pipeline_mode<synchronous>, transform_indices = @transform_7, window_bounds = array<i64: 8, 32>}]} {
    %c0 = arith.constant 0 : index
    %c0_0 = arith.constant 0 : index
    %0 = vector.load %arg7[%c0, %c0_0] : memref<11x32xf32, #tpu.memory_space<vmem>>, vector<11x32xf32>
    %1 = vector.extract_strided_slice %0 {offsets = [0, 0], sizes = [1, 32], strides = [1, 1]} : vector<11x32xf32> to vector<1x32xf32>
    %2 = vector.extract_strided_slice %0 {offsets = [1, 0], sizes = [1, 32], strides = [1, 1]} : vector<11x32xf32> to vector<1x32xf32>
    %3 = vector.extract_strided_slice %0 {offsets = [2, 0], sizes = [1, 32], strides = [1, 1]} : vector<11x32xf32> to vector<1x32xf32>
    %4 = vector.extract_strided_slice %0 {offsets = [3, 0], sizes = [1, 32], strides = [1, 1]} : vector<11x32xf32> to vector<1x32xf32>
    %5 = vector.extract_strided_slice %0 {offsets = [4, 0], sizes = [1, 32], strides = [1, 1]} : vector<11x32xf32> to vector<1x32xf32>
    %6 = vector.extract_strided_slice %0 {offsets = [5, 0], sizes = [1, 32], strides = [1, 1]} : vector<11x32xf32> to vector<1x32xf32>
    %7 = vector.extract_strided_slice %0 {offsets = [6, 0], sizes = [1, 32], strides = [1, 1]} : vector<11x32xf32> to vector<1x32xf32>
    %8 = vector.extract_strided_slice %0 {offsets = [7, 0], sizes = [1, 32], strides = [1, 1]} : vector<11x32xf32> to vector<1x32xf32>
    %9 = vector.extract_strided_slice %0 {offsets = [8, 0], sizes = [1, 32], strides = [1, 1]} : vector<11x32xf32> to vector<1x32xf32>
    %10 = vector.extract_strided_slice %0 {offsets = [9, 0], sizes = [1, 32], strides = [1, 1]} : vector<11x32xf32> to vector<1x32xf32>
    %11 = vector.extract_strided_slice %0 {offsets = [10, 0], sizes = [1, 32], strides = [1, 1]} : vector<11x32xf32> to vector<1x32xf32>
    %c0_1 = arith.constant 0 : index
    %c0_2 = arith.constant 0 : index
    %12 = vector.load %arg6[%c0_1, %c0_2] : memref<128x32xf32, #tpu.memory_space<vmem>>, vector<128x32xf32>
    %13 = vector.extract_strided_slice %12 {offsets = [0, 0], sizes = [32, 32], strides = [1, 1]} : vector<128x32xf32> to vector<32x32xf32>
    %14 = vector.extract_strided_slice %12 {offsets = [32, 0], sizes = [32, 32], strides = [1, 1]} : vector<128x32xf32> to vector<32x32xf32>
    %15 = vector.extract_strided_slice %12 {offsets = [64, 0], sizes = [32, 32], strides = [1, 1]} : vector<128x32xf32> to vector<32x32xf32>
    %16 = vector.extract_strided_slice %12 {offsets = [96, 0], sizes = [32, 32], strides = [1, 1]} : vector<128x32xf32> to vector<32x32xf32>
    %c0_3 = arith.constant 0 : index
    %c0_4 = arith.constant 0 : index
    %17 = vector.load %arg1[%c0_3, %c0_4] : memref<8x20xf32, #tpu.memory_space<vmem>>, vector<8x20xf32>
    %c0_5 = arith.constant 0 : index
    %c0_6 = arith.constant 0 : index
    %18 = vector.load %arg5[%c0_5, %c0_6] : memref<20x32xf32, #tpu.memory_space<vmem>>, vector<20x32xf32>
    %cst = arith.constant dense<0.000000e+00> : vector<8x32xf32>
    %19 = tpu.matmul %17, %18, %cst {dimension_numbers = #tpu.dot_dimension_numbers<[1], [0], [0], [1], [0, 0, 1, 1], [], []>} : vector<8x20xf32>, vector<20x32xf32>, vector<8x32xf32> -> vector<8x32xf32>
    %c0_7 = arith.constant 0 : index
    %c0_8 = arith.constant 0 : index
    %20 = vector.load %arg2[%c0_7, %c0_8] : memref<8x32xf32, #tpu.memory_space<vmem>>, vector<8x32xf32>
    %21 = arith.addf %19, %20 : vector<8x32xf32>
    %cst_9 = arith.constant dense<0.000000e+00> : vector<8x32xf32>
    %22 = tpu.matmul %21, %13, %cst_9 {dimension_numbers = #tpu.dot_dimension_numbers<[1], [0], [0], [1], [0, 0, 1, 1], [], []>} : vector<8x32xf32>, vector<32x32xf32>, vector<8x32xf32> -> vector<8x32xf32>
    %23 = vector.broadcast %1 : vector<1x32xf32> to vector<8x32xf32>
    %24 = arith.addf %22, %23 : vector<8x32xf32>
    %25 = vector.broadcast %2 : vector<1x32xf32> to vector<8x32xf32>
    %26 = arith.mulf %24, %25 : vector<8x32xf32>
    %cst_10 = arith.constant dense<0.000000e+00> : vector<8xf32>
    %27 = vector.multi_reduction <add>, %26, %cst_10 [1] : vector<8x32xf32> to vector<8xf32>
    %28 = vector.shape_cast %27 : vector<8xf32> to vector<8x1xf32>
    %cst_11 = arith.constant 0.176776692 : f32
    %29 = vector.broadcast %cst_11 : f32 to vector<8x1xf32>
    %30 = arith.mulf %28, %29 : vector<8x1xf32>
    %31 = vector.broadcast %3 : vector<1x32xf32> to vector<8x32xf32>
    %32 = arith.mulf %24, %31 : vector<8x32xf32>
    %cst_12 = arith.constant dense<0.000000e+00> : vector<8xf32>
    %33 = vector.multi_reduction <add>, %32, %cst_12 [1] : vector<8x32xf32> to vector<8xf32>
    %34 = vector.shape_cast %33 : vector<8xf32> to vector<8x1xf32>
    %cst_13 = arith.constant 0.176776692 : f32
    %35 = vector.broadcast %cst_13 : f32 to vector<8x1xf32>
    %36 = arith.mulf %34, %35 : vector<8x1xf32>
    %37 = tpu.iota {dimensions = array<i32: 1>} : vector<8x2xi32>
    %c0_14 = arith.constant 0 : index
    %c0_15 = arith.constant 0 : index
    %38 = vector.load %arg4[%c0_14, %c0_15] : memref<8x1xi32, #tpu.memory_space<vmem>>, vector<8x1xi32>
    %39 = vector.broadcast %38 : vector<8x1xi32> to vector<8x2xi32>
    %40 = arith.cmpi eq, %39, %37 : vector<8x2xi32>
    %41 = arith.extui %40 : vector<8x2xi1> to vector<8x2xi32>
    %42 = arith.sitofp %41 : vector<8x2xi32> to vector<8x2xf32>
    %c0_16 = arith.constant 0 : index
    %c0_17 = arith.constant 0 : index
    %43 = vector.load %arg3[%c0_16, %c0_17] : memref<8x2xf32, #tpu.memory_space<vmem>>, vector<8x2xf32>
    %44 = vector.extract_strided_slice %43 {offsets = [0, 0], sizes = [8, 1], strides = [1, 1]} : vector<8x2xf32> to vector<8x1xf32>
    %cst_18 = arith.constant 0.000000e+00 : f32
    %45 = vector.broadcast %cst_18 : f32 to vector<8x1xf32>
    %46 = arith.cmpf oge, %44, %45 : vector<8x1xf32>
    %47 = arith.extui %46 : vector<8x1xi1> to vector<8x1xi32>
    %48 = arith.sitofp %47 : vector<8x1xi32> to vector<8x1xf32>
    %49 = arith.mulf %48, %30 : vector<8x1xf32>
    %cst_19 = arith.constant 1.000000e+00 : f32
    %50 = vector.broadcast %cst_19 : f32 to vector<8x1xf32>
    %51 = arith.subf %50, %48 : vector<8x1xf32>
    %52 = arith.mulf %51, %36 : vector<8x1xf32>
    %53 = arith.addf %49, %52 : vector<8x1xf32>
    %cst_20 = arith.constant 0.000000e+00 : f32
    %54 = vector.broadcast %cst_20 : f32 to vector<8x1xf32>
    %55 = arith.maximumf %53, %54 : vector<8x1xf32>
    %56 = math.absf %53 : vector<8x1xf32>
    %cst_21 = arith.constant 0.000000e+00 : f32
    %57 = vector.broadcast %cst_21 : f32 to vector<8x1xf32>
    %58 = arith.subf %57, %56 : vector<8x1xf32>
    %59 = math.exp %58 : vector<8x1xf32>
    %cst_22 = arith.constant 1.000000e+00 : f32
    %60 = vector.broadcast %cst_22 : f32 to vector<8x1xf32>
    %61 = arith.addf %60, %59 : vector<8x1xf32>
    %62 = math.log %61 : vector<8x1xf32>
    %63 = arith.addf %55, %62 : vector<8x1xf32>
    %64 = vector.broadcast %63 : vector<8x1xf32> to vector<8x2xf32>
    %65 = arith.mulf %42, %64 : vector<8x2xf32>
    %cst_23 = arith.constant dense<0.000000e+00> : vector<2xf32>
    %66 = vector.multi_reduction <add>, %65, %cst_23 [0] : vector<8x2xf32> to vector<2xf32>
    %67 = vector.shape_cast %66 : vector<2xf32> to vector<1x2xf32>
    %68 = vector.broadcast %67 : vector<1x2xf32> to vector<8x2xf32>
    %69 = arith.mulf %42, %68 : vector<8x2xf32>
    %cst_24 = arith.constant dense<0.000000e+00> : vector<8xf32>
    %70 = vector.multi_reduction <add>, %69, %cst_24 [1] : vector<8x2xf32> to vector<8xf32>
    %71 = vector.shape_cast %70 : vector<8xf32> to vector<8x1xf32>
    %72 = arith.mulf %44, %63 : vector<8x1xf32>
    %73 = arith.divf %72, %71 : vector<8x1xf32>
    %74 = vector.broadcast %48 : vector<8x1xf32> to vector<8x32xf32>
    %75 = vector.broadcast %4 : vector<1x32xf32> to vector<8x32xf32>
    %76 = arith.mulf %74, %75 : vector<8x32xf32>
    %cst_25 = arith.constant 1.000000e+00 : f32
    %77 = vector.broadcast %cst_25 : f32 to vector<8x1xf32>
    %78 = arith.subf %77, %48 : vector<8x1xf32>
    %79 = vector.broadcast %78 : vector<8x1xf32> to vector<8x32xf32>
    %80 = vector.broadcast %5 : vector<1x32xf32> to vector<8x32xf32>
    %81 = arith.mulf %79, %80 : vector<8x32xf32>
    %82 = arith.addf %76, %81 : vector<8x32xf32>
    %83 = vector.broadcast %73 : vector<8x1xf32> to vector<8x32xf32>
    %84 = arith.mulf %83, %82 : vector<8x32xf32>
    %85 = vector.extract_strided_slice %43 {offsets = [0, 1], sizes = [8, 1], strides = [1, 1]} : vector<8x2xf32> to vector<8x1xf32>
    %cst_26 = arith.constant 0.000000e+00 : f32
    %86 = vector.broadcast %cst_26 : f32 to vector<8x1xf32>
    %87 = arith.cmpf oge, %85, %86 : vector<8x1xf32>
    %88 = arith.extui %87 : vector<8x1xi1> to vector<8x1xi32>
    %89 = arith.sitofp %88 : vector<8x1xi32> to vector<8x1xf32>
    %90 = arith.mulf %89, %30 : vector<8x1xf32>
    %cst_27 = arith.constant 1.000000e+00 : f32
    %91 = vector.broadcast %cst_27 : f32 to vector<8x1xf32>
    %92 = arith.subf %91, %89 : vector<8x1xf32>
    %93 = arith.mulf %92, %36 : vector<8x1xf32>
    %94 = arith.addf %90, %93 : vector<8x1xf32>
    %cst_28 = arith.constant 0.000000e+00 : f32
    %95 = vector.broadcast %cst_28 : f32 to vector<8x1xf32>
    %96 = arith.maximumf %94, %95 : vector<8x1xf32>
    %97 = math.absf %94 : vector<8x1xf32>
    %cst_29 = arith.constant 0.000000e+00 : f32
    %98 = vector.broadcast %cst_29 : f32 to vector<8x1xf32>
    %99 = arith.subf %98, %97 : vector<8x1xf32>
    %100 = math.exp %99 : vector<8x1xf32>
    %cst_30 = arith.constant 1.000000e+00 : f32
    %101 = vector.broadcast %cst_30 : f32 to vector<8x1xf32>
    %102 = arith.addf %101, %100 : vector<8x1xf32>
    %103 = math.log %102 : vector<8x1xf32>
    %104 = arith.addf %96, %103 : vector<8x1xf32>
    %105 = vector.broadcast %104 : vector<8x1xf32> to vector<8x2xf32>
    %106 = arith.mulf %42, %105 : vector<8x2xf32>
    %cst_31 = arith.constant dense<0.000000e+00> : vector<2xf32>
    %107 = vector.multi_reduction <add>, %106, %cst_31 [0] : vector<8x2xf32> to vector<2xf32>
    %108 = vector.shape_cast %107 : vector<2xf32> to vector<1x2xf32>
    %109 = vector.broadcast %108 : vector<1x2xf32> to vector<8x2xf32>
    %110 = arith.mulf %42, %109 : vector<8x2xf32>
    %cst_32 = arith.constant dense<0.000000e+00> : vector<8xf32>
    %111 = vector.multi_reduction <add>, %110, %cst_32 [1] : vector<8x2xf32> to vector<8xf32>
    %112 = vector.shape_cast %111 : vector<8xf32> to vector<8x1xf32>
    %113 = arith.mulf %85, %104 : vector<8x1xf32>
    %114 = arith.divf %113, %112 : vector<8x1xf32>
    %115 = vector.broadcast %89 : vector<8x1xf32> to vector<8x32xf32>
    %116 = vector.broadcast %4 : vector<1x32xf32> to vector<8x32xf32>
    %117 = arith.mulf %115, %116 : vector<8x32xf32>
    %cst_33 = arith.constant 1.000000e+00 : f32
    %118 = vector.broadcast %cst_33 : f32 to vector<8x1xf32>
    %119 = arith.subf %118, %89 : vector<8x1xf32>
    %120 = vector.broadcast %119 : vector<8x1xf32> to vector<8x32xf32>
    %121 = vector.broadcast %5 : vector<1x32xf32> to vector<8x32xf32>
    %122 = arith.mulf %120, %121 : vector<8x32xf32>
    %123 = arith.addf %117, %122 : vector<8x32xf32>
    %124 = vector.broadcast %114 : vector<8x1xf32> to vector<8x32xf32>
    %125 = arith.mulf %124, %123 : vector<8x32xf32>
    %126 = tpu.concatenate %84, %125 in 0 : vector<8x32xf32>, vector<8x32xf32> -> vector<16x32xf32>
    %127 = vector.broadcast %6 : vector<1x32xf32> to vector<16x32xf32>
    %128 = arith.mulf %127, %126 : vector<16x32xf32>
    %cst_34 = arith.constant 0.000000e+00 : f32
    %129 = vector.broadcast %cst_34 : f32 to vector<1x32xf32>
    %130 = arith.subf %129, %7 : vector<1x32xf32>
    %131 = vector.broadcast %130 : vector<1x32xf32> to vector<16x32xf32>
    %132 = arith.mulf %131, %126 : vector<16x32xf32>
    %133 = math.exp %132 : vector<16x32xf32>
    %cst_35 = arith.constant 1.000000e+00 : f32
    %134 = vector.broadcast %cst_35 : f32 to vector<16x32xf32>
    %135 = arith.addf %134, %133 : vector<16x32xf32>
    %cst_36 = arith.constant 1.000000e+00 : f32
    %136 = vector.broadcast %cst_36 : f32 to vector<16x32xf32>
    %137 = arith.divf %136, %135 : vector<16x32xf32>
    %138 = arith.mulf %128, %137 : vector<16x32xf32>
    %cst_37 = arith.constant dense<0.000000e+00> : vector<16x32xf32>
    %139 = tpu.matmul %138, %14, %cst_37 {dimension_numbers = #tpu.dot_dimension_numbers<[1], [0], [0], [1], [0, 0, 1, 1], [], []>} : vector<16x32xf32>, vector<32x32xf32>, vector<16x32xf32> -> vector<16x32xf32>
    %140 = vector.broadcast %8 : vector<1x32xf32> to vector<16x32xf32>
    %141 = arith.mulf %140, %139 : vector<16x32xf32>
    %cst_38 = arith.constant 0.000000e+00 : f32
    %142 = vector.broadcast %cst_38 : f32 to vector<1x32xf32>
    %143 = arith.subf %142, %9 : vector<1x32xf32>
    %144 = vector.broadcast %143 : vector<1x32xf32> to vector<16x32xf32>
    %145 = arith.mulf %144, %139 : vector<16x32xf32>
    %146 = math.exp %145 : vector<16x32xf32>
    %cst_39 = arith.constant 1.000000e+00 : f32
    %147 = vector.broadcast %cst_39 : f32 to vector<16x32xf32>
    %148 = arith.addf %147, %146 : vector<16x32xf32>
    %cst_40 = arith.constant 1.000000e+00 : f32
    %149 = vector.broadcast %cst_40 : f32 to vector<16x32xf32>
    %150 = arith.divf %149, %148 : vector<16x32xf32>
    %151 = arith.mulf %141, %150 : vector<16x32xf32>
    %cst_41 = arith.constant dense<0.000000e+00> : vector<16x32xf32>
    %152 = tpu.matmul %151, %15, %cst_41 {dimension_numbers = #tpu.dot_dimension_numbers<[1], [0], [0], [1], [0, 0, 1, 1], [], []>} : vector<16x32xf32>, vector<32x32xf32>, vector<16x32xf32> -> vector<16x32xf32>
    %153 = arith.addf %126, %152 : vector<16x32xf32>
    %154 = vector.broadcast %10 : vector<1x32xf32> to vector<16x32xf32>
    %155 = arith.mulf %154, %153 : vector<16x32xf32>
    %cst_42 = arith.constant 0.000000e+00 : f32
    %156 = vector.broadcast %cst_42 : f32 to vector<1x32xf32>
    %157 = arith.subf %156, %11 : vector<1x32xf32>
    %158 = vector.broadcast %157 : vector<1x32xf32> to vector<16x32xf32>
    %159 = arith.mulf %158, %153 : vector<16x32xf32>
    %160 = math.exp %159 : vector<16x32xf32>
    %cst_43 = arith.constant 1.000000e+00 : f32
    %161 = vector.broadcast %cst_43 : f32 to vector<16x32xf32>
    %162 = arith.addf %161, %160 : vector<16x32xf32>
    %cst_44 = arith.constant 1.000000e+00 : f32
    %163 = vector.broadcast %cst_44 : f32 to vector<16x32xf32>
    %164 = arith.divf %163, %162 : vector<16x32xf32>
    %165 = arith.mulf %155, %164 : vector<16x32xf32>
    %cst_45 = arith.constant dense<0.000000e+00> : vector<16x32xf32>
    %166 = tpu.matmul %165, %16, %cst_45 {dimension_numbers = #tpu.dot_dimension_numbers<[1], [0], [0], [1], [0, 0, 1, 1], [], []>} : vector<16x32xf32>, vector<32x32xf32>, vector<16x32xf32> -> vector<16x32xf32>
    %167 = vector.extract_strided_slice %166 {offsets = [0, 0], sizes = [8, 32], strides = [1, 1]} : vector<16x32xf32> to vector<8x32xf32>
    %168 = arith.addf %21, %167 : vector<8x32xf32>
    %169 = vector.extract_strided_slice %166 {offsets = [8, 0], sizes = [8, 32], strides = [1, 1]} : vector<16x32xf32> to vector<8x32xf32>
    %170 = arith.addf %168, %169 : vector<8x32xf32>
    %c0_46 = arith.constant 0 : index
    %c0_47 = arith.constant 0 : index
    %171 = vector.load %arg8[%c0_46, %c0_47] : memref<8x32xf32, #tpu.memory_space<vmem>>, vector<8x32xf32>
    tpu.vector_store %arg8[%c0_46, %c0_47], %170 {strides = array<i32>} : memref<8x32xf32, #tpu.memory_space<vmem>>, vector<8x32xf32>,
    return
  }
  func.func @transform_0(%arg0: i32) -> (i32, i32) {
    %c0_i32 = arith.constant 0 : i32
    %c0_i32_0 = arith.constant 0 : i32
    %c0_i32_1 = arith.constant 0 : i32
    return %c0_i32, %c0_i32_0 : i32, i32
  }
  func.func @transform_1(%arg0: i32) -> (i32, i32) {
    %c0_i32 = arith.constant 0 : i32
    %c0_i32_0 = arith.constant 0 : i32
    %c0_i32_1 = arith.constant 0 : i32
    return %c0_i32, %c0_i32_0 : i32, i32
  }
  func.func @transform_2(%arg0: i32) -> (i32, i32) {
    %c0_i32 = arith.constant 0 : i32
    %c0_i32_0 = arith.constant 0 : i32
    %c0_i32_1 = arith.constant 0 : i32
    return %c0_i32, %c0_i32_0 : i32, i32
  }
  func.func @transform_3(%arg0: i32) -> (i32, i32) {
    %c0_i32 = arith.constant 0 : i32
    %c0_i32_0 = arith.constant 0 : i32
    %c0_i32_1 = arith.constant 0 : i32
    return %c0_i32, %c0_i32_0 : i32, i32
  }
  func.func @transform_4(%arg0: i32) -> (i32, i32) {
    %c0_i32 = arith.constant 0 : i32
    %c0_i32_0 = arith.constant 0 : i32
    %c0_i32_1 = arith.constant 0 : i32
    return %c0_i32, %c0_i32_0 : i32, i32
  }
  func.func @transform_5(%arg0: i32) -> (i32, i32) {
    %c0_i32 = arith.constant 0 : i32
    %c0_i32_0 = arith.constant 0 : i32
    %c0_i32_1 = arith.constant 0 : i32
    return %c0_i32, %c0_i32_0 : i32, i32
  }
  func.func @transform_6(%arg0: i32) -> (i32, i32) {
    %c0_i32 = arith.constant 0 : i32
    %c0_i32_0 = arith.constant 0 : i32
    %c0_i32_1 = arith.constant 0 : i32
    return %c0_i32, %c0_i32_0 : i32, i32
  }
  func.func @transform_7(%arg0: i32) -> (i32, i32) {
    %c0_i32 = arith.constant 0 : i32
    %c0_i32_0 = arith.constant 0 : i32
    %c0_i32_1 = arith.constant 0 : i32
    return %c0_i32, %c0_i32_0 : i32, i32
  }
}

</mosaic_0001>

<bundles_post_ra>
// kernel: tpu_custom_call.1
= control target key start
LH: loop header
LB: loop body
LE: loop exit
PB: predicated region body
PF: predicated region fallthrough
CT: control target
= control target key end

     0   :  { %v860_v2 = vmov 0.0|0.0   ;;  %vm861_vm0 = vmmov 0   ;;  %v862_v6 = vmov 0.0   ;;  %s1065_s0 = inlined_call_operand.vmem [shape: f32[8,20], index: 0, kind: input, shape index: {}]   ;;  %s1066_s1 = inlined_call_operand.vmem [shape: f32[8,32], index: 1, kind: input, shape index: {}]   ;;  %s1067_s2 = inlined_call_operand.vmem [shape: f32[8,2], index: 2, kind: input, shape index: {}]   ;;  %s1068_s3 = inlined_call_operand.vmem [shape: s32[8,1], index: 3, kind: input, shape index: {}]   ;;  %s1069_s4 = inlined_call_operand.vmem [shape: f32[20,32], index: 4, kind: input, shape index: {}]   ;;  %s1070_s5 = inlined_call_operand.vmem [shape: f32[128,32], index: 5, kind: input, shape index: {}]   ;;  %s1071_s6 = inlined_call_operand.vmem [shape: f32[11,32], index: 6, kind: input, shape index: {}]   ;;  %s1072_s7 = inlined_call_operand.hbm [shape: f32[8,32], index: 7, kind: output, shape index: {}]  }
   0x1   :  { %v46_v0 = vld [vmem:[%s1069_s4] sm:$0xff]  ;;  %v47_v1 = vld [vmem:[%s1069_s4 + $0x8] sm:$0xff]  ;;  %760 = vmatprep.subr.bf16.mxu0 %v860_v2  ;;  %763 = vmatprep.subr.bf16.mxu1 %v860_v2 }
   0x2   :  { %v761_v3 = vpack.c.bf16 %v47_v1, %v46_v0  ;;  %v29_v4 = vld [vmem:[%s1070_s5] sm:$0xff]  ;;  %v30_v5 = vld [vmem:[%s1070_s5 + $0x8] sm:$0xff]  ;;  %713 = vmatprep.mubr.msk.f32.mxu0 %vm861_vm0, %v862_v6  ;;  %724 = vmatprep.mubr.msk.f32.mxu1 %vm861_vm0, %v862_v6 }
   0x3   :  { %v764_v7 = vpack.c.bf16 %v30_v5, %v29_v4 }
   0x4   :  { %12 = vsyncpa [#allocation3], 0  ;;  %762 = vmatpush3.bf16.msra.mxu0 %v761_v3  ;;  %v48_v8 = vld [vmem:[%s1069_s4 + $0x10] sm:$0xf]  ;;  %vm54_vm1 = vcmask 1043456   ;;  %v45_v9 = vld [vmem:[%s1065_s0] sm:$0xff]  ;;  %v128_v17 = vlaneseq }
   0x5   :  { %711 = vmatprep.subr.mxu0 %v862_v6  ;;  %765 = vmatpush3.bf16.msra.mxu1 %v764_v7  ;;  %vm50_vm2 = vcmask 162816   ;;  %v31_v10 = vld [vmem:[%s1070_s5 + $0x10] sm:$0xff]  ;;  %v32_v11 = vld [vmem:[%s1070_s5 + $0x18] sm:$0xff]  ;;  %v49_v13 = vld [vmem:[%s1066_s1] sm:$0xff]  ;;  %vm132_vm3 = vcmask 261120   ;;  %v863_v34 = vmov 0  }
   0x6   :  { %766 = vmatprep.subr.bf16.mxu1 %v860_v2  ;;  %v767_v12 = vpack.c.bf16 %v32_v11, %v31_v10  ;;  %v940_v18 = vshrl.u32 %v128_v17, 7  ;;  %v946_v20 = vld [vmem:[%s1071_s6] sm:$0xff]  ;;  %799 = vset.pattern.permute.xlu1 %v863_v34  ;;  %v864_v35 = vmov 1   ;;  %v225_v55 = vand.u32 127, %v128_v17 }
   0x7   :  { %v226_v33 = vld [vmem:[%s1068_s3] sm:$0xff]  ;;  %800 = vset.pattern.permute.xlu0 %v864_v35  ;;  %vm256_vm6 = vcmask 15360  }
   0x8   :  { %712 = vmatpush3.msk.msra.mxu0 %vm54_vm1, %v48_v8  ;;  %v130_v19 = vsub.s32 0, %v940_v18  ;;  %v208_v21 = vsub.s32 1, %v940_v18  ;;  %v217_v23 = vsub.s32 2, %v940_v18  ;;  %228 = vperm.xlu1 %799, %v226_v33   ;;  %v968_v36 = vld [vmem:[%s1067_s2] sm:$0xff]  ;;  %v36_v33 = vld [vmem:[%s1070_s5 + $0x38] sm:$0xff] }
   0x9   :  { %714 = vmatmul.mubr.msk.f32.vlgmr.msra.gmra.mrb[0].mxu0 %vm50_vm2, %v45_v9  ;;  %768 = vmatpush3.bf16.msra.mxu1 %v767_v12  ;;  %vm234_vm4 = vcmp.ge.f32.partialorder %v968_v36, 0.0 }
   0xa   :  { %v131_v22 = vrot.slane %v946_v20, %v130_v19  ;;  %v209_v24 = vrot.slane %v946_v20, %v208_v21  ;;  %v218_v28 = vrot.slane %v946_v20, %v217_v23  ;;  %v673_v38 = vsel %vm234_vm4, 1.0, %v862_v6 }
   0xb   :  { %v238_v40 = vsub.f32 1.0, %v673_v38 }
  0x87   :  { %v229_v56 = vpop.permute.xlu1 %228 }
  0x88   :  { %vm230_vm5 = vcmp.eq.s32.totalorder %v229_v56, %v225_v55 }
  0x89   :  { %v672_v57 = vsel %vm230_vm5, 1.0, %v862_v6 }
  0xdc   :  { %v124_v14 = vpop.f32.mrb[0].mxu0 }
  0xdd   :  { %v936_v15 = vadd.f32 %v124_v14, %v49_v13  ;;  %v715_v16 = vpop.f32.mrb[1].mxu0 }
  0xdf   :  { %725 = vmatmul.mubr.msk.f32.vlgmr.msra.gmra.mrb[0].mxu1 %vm132_vm3, %v936_v15 }
 0x1b2   :  { %v202_v25 = vpop.f32.mrb[0].mxu1 }
 0x1b3   :  { %v203_v26 = vadd.f32 %v202_v25, %v131_v22  ;;  %v726_v27 = vpop.f32.mrb[1].mxu1 }
 0x1b5   :  { %v210_v29 = vmul.f32 %v209_v24, %v203_v26  ;;  %v219_v31 = vmul.f32 %v218_v28, %v203_v26 }
 0x1b7   :  { %v211_v30 = vsel %vm132_vm3, %v210_v29, 0.0  ;;  %v220_v32 = vsel %vm132_vm3, %v219_v31, 0.0  ;;  %v33_v29 = vld [vmem:[%s1070_s5 + $0x20] sm:$0xff] }
 0x1b8   :  { %212 = vadd.xlane.f32.xlu0 %v211_v30  ;;  %v34_v30 = vld [vmem:[%s1070_s5 + $0x28] sm:$0xff] }
 0x1b9   :  { %v769_v31 = vpack.c.bf16 %v34_v30, %v33_v29 }
 0x1bb   :  { %770 = vmatprep.subr.bf16.mxu0 %v769_v31 }
 0x1bc   :  { %221 = vadd.xlane.f32.xlu0 %v220_v32  ;;  %772 = vmatpush3.bf16.msra.mxu0 %v769_v31  ;;  %v35_v32 = vld [vmem:[%s1070_s5 + $0x30] sm:$0xff] }
 0x245   :  { %v213_v37 = vpop.xlane.xlu0 %212 }
 0x246   :  { %v214_v39 = vmul.f32 0.17677669, %v213_v37  ;;  %v278_v37 = vsub.s32 3, %v940_v18 }
 0x248   :  { %v237_v43 = vmul.f32 %v673_v38, %v214_v39 }
 0x249   :  { %v222_v41 = vpop.xlane.xlu0 %221 }
 0x24a   :  { %v223_v42 = vmul.f32 0.17677669, %v222_v41  ;;  %v279_v41 = vrot.slane %v946_v20, %v278_v37 }
 0x24c   :  { %v239_v44 = vmul.f32 %v238_v40, %v223_v42 }
 0x24e   :  { %v240_v45 = vadd.f32 %v239_v44, %v237_v43  ;;  %v339_v44 = vsub.f32 0.0, %v946_v20 }
 0x250   :  { %v242_v46 = vand.u32 2147483647, %v240_v45  ;;  %v241_v52 = vmax.f32 %v240_v45, 0.0  ;;  %v342_v45 = vsub.s32 6, %v940_v18 }
 0x252   :  { %v243_v47 = vsub.f32 0.0, %v242_v46 }
 0x254   :  { %v244_v48 = vmul.f32 1.442695, %v243_v47 }
 0x256   :  { %804 = vpow2.f32 %v244_v48 }
 0x260   :  { %v805_v49 = vpop.eup %804 }
 0x261   :  { %v246_v50 = vadd.f32 1.0, %v805_v49  ;;  %v343_v49 = vrot.slane %v339_v44, %v342_v45 }
 0x263   :  { %806 = vlog2.f32 %v246_v50 }
 0x26d   :  { %v807_v51 = vpop.eup %806 }
 0x26e   :  { %v248_v53 = vmul.f32 0.6931472, %v807_v51 }
 0x270   :  { %v249_v54 = vadd.f32 %v248_v53, %v241_v52 }
 0x272   :  { %299 = vperm.xlu0 %800, %v249_v54   ;;  %252 = vperm.xlu1 %799, %v249_v54   ;;  %v268_v24 = vmul.f32 %v249_v54, %v968_v36 }
 0x276   :  { %317 = vperm.xlu0 %800, %v673_v38  }
 0x27a   :  { %801 = vset.pattern.permute.xlu0 %v863_v34  ;;  %v773_v34 = vpack.c.bf16 %v36_v33, %v35_v32  ;;  %v441_v33 = vsub.s32 7, %v940_v18 }
 0x27b   :  { %283 = vperm.xlu0 %801, %v238_v40  }
 0x27c   :  { %774 = vmatprep.subr.bf16.mxu0 %v773_v34 }
 0x27d   :  { %776 = vmatpush3.bf16.msra.mxu0 %v773_v34  ;;  %v442_v34 = vrot.slane %v946_v20, %v441_v33 }
 0x2f1   :  { %v300_v58 = vpop.permute.xlu0 %299  ;;  %v253_v59 = vpop.permute.xlu1 %252 }
 0x2f2   :  { %v302_v60 = vmul.f32 %v672_v57, %v300_v58  ;;  %v255_v61 = vmul.f32 %v672_v57, %v253_v59 }
 0x2f4   :  { %v303_v62 = vsel %vm256_vm6, %v302_v60, 0.0  ;;  %v257_v63 = vsel %vm256_vm6, %v255_v61, 0.0 }
 0x2f5   :  { %v304_v0 = vrot.slane %v303_v62, 4  ;;  %v258_v1 = vrot.slane %v257_v63, 4  ;;  %v318_v36 = vpop.permute.xlu0 %317 }
 0x2f6   :  { %v320_v51 = vmul.f32 %v318_v36, %v279_v41 }
 0x2f7   :  { %v305_v2 = vadd.f32 %v304_v0, %v303_v62  ;;  %v259_v3 = vadd.f32 %v258_v1, %v257_v63  ;;  %v335_v63 = vsub.s32 5, %v940_v18 }
 0x2f9   :  { %v306_v4 = vrot.slane %v305_v2, 2  ;;  %v260_v5 = vrot.slane %v259_v3, 2  ;;  %v336_v1 = vrot.slane %v946_v20, %v335_v63 }
 0x2fb   :  { %v307_v7 = vadd.f32 %v306_v4, %v305_v2  ;;  %v261_v8 = vadd.f32 %v260_v5, %v259_v3 }
 0x2fd   :  { %v262_v9 = vrot.slane %v261_v8, 1  ;;  %v308_v10 = vrot.slane %v307_v7, 1 }
 0x2ff   :  { %v263_v6 = vadd.f32 %v262_v9, %v261_v8  ;;  %v309_v11 = vadd.f32 %v308_v10, %v307_v7  ;;  %v37_v9 = vld [vmem:[%s1070_s5 + $0x40] sm:$0xff]  ;;  %v38_v10 = vld [vmem:[%s1070_s5 + $0x48] sm:$0xff] }
 0x301   :  { %v264_v12 = vmul.f32 %v672_v57, %v263_v6  ;;  %v310_v14 = vmul.f32 %v672_v57, %v309_v11  ;;  %v777_v6 = vpack.c.bf16 %v38_v10, %v37_v9  ;;  %v39_v11 = vld [vmem:[%s1070_s5 + $0x50] sm:$0xff] }
 0x303   :  { %v265_v13 = vsel %vm256_vm6, %v264_v12, 0.0  ;;  %v311_v16 = vsel %vm256_vm6, %v310_v14, 0.0  ;;  %778 = vmatprep.subr.bf16.mxu1 %v777_v6  ;;  %v40_v12 = vld [vmem:[%s1070_s5 + $0x58] sm:$0xff]  ;;  %v28_v14 = vld [vmem:[%s1071_s6 + $0x8] sm:$0x7] }
 0x304   :  { %266 = vadd.xlane.f32.xlu1 %v265_v13  ;;  %780 = vmatpush3.bf16.msra.mxu1 %v777_v6  ;;  %v781_v13 = vpack.c.bf16 %v40_v12, %v39_v11 }
 0x306   :  { %782 = vmatprep.subr.bf16.mxu1 %v781_v13 }
 0x308   :  { %312 = vadd.xlane.f32.xlu1 %v311_v16  ;;  %784 = vmatpush3.bf16.msra.mxu1 %v781_v13  ;;  %v445_v16 = vsub.f32 0.0, %v28_v14 }
 0x30a   :  { %v556_v45 = vrot.slane %v445_v16, %v217_v23  ;;  %v550_v23 = vrot.slane %v28_v14, %v208_v21 }
 0x319   :  { %273 = vperm.xlu1 %799, %v673_v38  }
 0x31d   :  { %802 = vset.pattern.permute.xlu1 %v864_v35 }
 0x31e   :  { %322 = vperm.xlu1 %802, %v238_v40   ;;  %v284_v40 = vpop.permute.xlu0 %283 }
 0x391   :  { %v267_v17 = vpop.xlane.xlu1 %266 }
 0x392   :  { %808 = vrcp.f32 %v267_v17  ;;  %v449_v17 = vrot.slane %v445_v16, %v130_v19 }
 0x395   :  { %v313_v22 = vpop.xlane.xlu1 %312 }
 0x396   :  { %810 = vrcp.f32 %v313_v22 }
 0x399   :  { %v274_v38 = vpop.permute.xlu1 %273 }
 0x39a   :  { %v280_v43 = vmul.f32 %v279_v41, %v274_v38  ;;  %v42_v41 = vld [vmem:[%s1070_s5 + $0x68] sm:$0xff] }
 0x39c   :  { %v809_v25 = vpop.eup %808 }
 0x39d   :  { %v270_v26 = vmul.f32 %v809_v25, %v268_v24  ;;  %v323_v46 = vpop.permute.xlu1 %322 }
 0x39f   :  { %294 = vperm.xlu0 %801, %v270_v26  }
 0x3a0   :  { %v811_v27 = vpop.eup %810 }
 0x3a1   :  { %v315_v28 = vmul.f32 %v811_v27, %v268_v24 }
 0x3a3   :  { %329 = vperm.xlu1 %802, %v315_v28   ;;  %803 = vset.pattern.permute.xlu0 %v864_v35  ;;  %v288_v35 = vsub.s32 4, %v940_v18 }
 0x3a5   :  { %v289_v39 = vrot.slane %v946_v20, %v288_v35  ;;  %v43_v20 = vld [vmem:[%s1070_s5 + $0x70] sm:$0xff] }
 0x3a7   :  { %v290_v42 = vmul.f32 %v289_v39, %v284_v40  ;;  %v325_v47 = vmul.f32 %v323_v46, %v289_v39  ;;  %v41_v40 = vld [vmem:[%s1070_s5 + $0x60] sm:$0xff] }
 0x3a9   :  { %v291_v48 = vadd.f32 %v290_v42, %v280_v43  ;;  %v326_v54 = vadd.f32 %v325_v47, %v320_v51  ;;  %v785_v42 = vpack.c.bf16 %v42_v41, %v41_v40  ;;  %v44_v43 = vld [vmem:[%s1070_s5 + $0x78] sm:$0xff]  ;;  %s865_s5 = smov [#allocation2]  }
 0x3aa   :  { %v789_v44 = vpack.c.bf16 %v44_v43, %v43_v20  ;;  %s661_s19 = sshll.u32 %s865_s5, 4  ;;  %s662_s19 = int_to_ptr.vmem [resolvable:$true] %s661_s19 }
 0x3ab   :  { %786 = vmatprep.subr.bf16.mxu0 %v785_v42  ;;  %s836_s20 = scalar_lea.vmem %s662_s19, 128  ;;  %p841_p1 = scmp.lt.s32.totalorder %s662_s19, %s662_s19 }
 0x3ac   :  { %p837_p0 = scmp.ne.s32.totalorder %s662_s19, %s836_s20  ;;  %p842_p2 = scmp.lt.s32.totalorder %s836_s20, %s836_s20 }
 0x3ae   :  { %p843_p3 = por %p842_p2, %p841_p1 }
 0x3b0   :  { %p844_p4 = pnand %p843_p3, %p837_p0 }
 0x41e   :  { %v295_v50 = vpop.permute.xlu0 %294 }
 0x41f   :  { %v998_v52 = vmul.f32 %v295_v50, %v291_v48 }
 0x421   :  { %v344_v53 = vmul.f32 %v343_v49, %v998_v52  ;;  %v337_v2 = vmul.f32 %v336_v1, %v998_v52 }
 0x422   :  { %v330_v55 = vpop.permute.xlu1 %329 }
 0x423   :  { %v346_v56 = vmul.f32 1.442695, %v344_v53  ;;  %v1001_v57 = vmul.f32 %v330_v55, %v326_v54 }
 0x425   :  { %812 = vpow2.f32 %v346_v56  ;;  %v345_v58 = vmul.f32 %v343_v49, %v1001_v57  ;;  %v338_v5 = vmul.f32 %v336_v1, %v1001_v57 }
 0x427   :  { %v348_v59 = vmul.f32 1.442695, %v345_v58 }
 0x429   :  { %814 = vpow2.f32 %v348_v59 }
 0x42f   :  { %v813_v60 = vpop.eup %812 }
 0x430   :  { %v350_v61 = vadd.f32 1.0, %v813_v60 }
 0x432   :  { %816 = vrcp.f32 %v350_v61 }
 0x433   :  { %v815_v62 = vpop.eup %814 }
 0x434   :  { %v351_v0 = vadd.f32 1.0, %v815_v62 }
 0x436   :  { %818 = vrcp.f32 %v351_v0 }
 0x43c   :  { %v817_v3 = vpop.eup %816 }
 0x43d   :  { %v356_v4 = vmul.f32 %v817_v3, %v337_v2 }
 0x43f   :  { %735 = vmatprep.mubr.msk.f32.mxu0 %vm132_vm3, %v356_v4 }
 0x440   :  { %v819_v7 = vpop.eup %818 }
 0x441   :  { %v357_v8 = vmul.f32 %v819_v7, %v338_v5 }
 0x443   :  { %736 = vmatmul.mubr.msk.f32.vlgmr.msra.gmra.mrb[2].mxu0 %vm132_vm3, %v357_v8 }
 0x444   :  { %788 = vmatpush3.bf16.msra.mxu0 %v785_v42 }
 0x445   :  { %790 = vmatprep.subr.bf16.mxu0 %v789_v44 }
 0x448   :  { %792 = vmatpush3.bf16.msra.mxu0 %v789_v44 }
 0x516   :  { %v737_v22 = vpop.f32.mrb[2].mxu0 }
 0x517   :  { %v451_v24 = vmul.f32 %v737_v22, %v449_v17  ;;  %v430_v25 = vpop.f32.mrb[3].mxu0  ;;  %v444_v37 = vmul.f32 %v737_v22, %v442_v34 }
 0x518   :  { %v450_v26 = vmul.f32 %v449_v17, %v430_v25  ;;  %v443_v19 = vmul.f32 %v442_v34, %v430_v25 }
 0x519   :  { %v454_v27 = vmul.f32 1.442695, %v451_v24 }
 0x51a   :  { %v452_v28 = vmul.f32 1.442695, %v450_v26 }
 0x51b   :  { %820 = vpow2.f32 %v454_v27 }
 0x51c   :  { %822 = vpow2.f32 %v452_v28 }
 0x525   :  { %v821_v29 = vpop.eup %820 }
 0x526   :  { %v823_v30 = vpop.eup %822  ;;  %v457_v31 = vadd.f32 1.0, %v821_v29 }
 0x527   :  { %v456_v32 = vadd.f32 1.0, %v823_v30 }
 0x528   :  { %824 = vrcp.f32 %v457_v31 }
 0x529   :  { %826 = vrcp.f32 %v456_v32 }
 0x532   :  { %v825_v35 = vpop.eup %824 }
 0x533   :  { %v827_v36 = vpop.eup %826  ;;  %v463_v39 = vmul.f32 %v825_v35, %v444_v37 }
 0x534   :  { %v462_v38 = vmul.f32 %v827_v36, %v443_v19 }
 0x536   :  { %746 = vmatprep.mubr.msk.f32.mxu1 %vm132_vm3, %v462_v38 }
 0x537   :  { %747 = vmatmul.mubr.msk.f32.vlgmr.msra.gmra.mrb[2].mxu1 %vm132_vm3, %v463_v39 }
 0x60a   :  { %v748_v46 = vpop.f32.mrb[2].mxu1 }
 0x60b   :  { %v546_v47 = vadd.f32 %v748_v46, %v1001_v57  ;;  %v536_v48 = vpop.f32.mrb[3].mxu1 }
 0x60c   :  { %v545_v49 = vadd.f32 %v536_v48, %v998_v52 }
 0x60d   :  { %v558_v50 = vmul.f32 %v556_v45, %v546_v47  ;;  %v552_v62 = vmul.f32 %v550_v23, %v546_v47 }
 0x60e   :  { %v557_v51 = vmul.f32 %v556_v45, %v545_v49  ;;  %v551_v57 = vmul.f32 %v550_v23, %v545_v49 }
 0x60f   :  { %v561_v53 = vmul.f32 1.442695, %v558_v50 }
 0x610   :  { %v559_v54 = vmul.f32 1.442695, %v557_v51 }
 0x611   :  { %828 = vpow2.f32 %v561_v53 }
 0x612   :  { %830 = vpow2.f32 %v559_v54 }
 0x61b   :  { %v829_v55 = vpop.eup %828 }
 0x61c   :  { %v831_v56 = vpop.eup %830  ;;  %v564_v58 = vadd.f32 1.0, %v829_v55 }
 0x61d   :  { %v563_v59 = vadd.f32 1.0, %v831_v56 }
 0x61e   :  { %832 = vrcp.f32 %v564_v58 }
 0x61f   :  { %834 = vrcp.f32 %v563_v59 }
 0x628   :  { %v833_v60 = vpop.eup %832 }
 0x629   :  { %v835_v61 = vpop.eup %834  ;;  %v570_v63 = vmul.f32 %v833_v60, %v552_v62 }
 0x62a   :  { %v569_v52 = vmul.f32 %v835_v61, %v551_v57 }
 0x62c   :  { %757 = vmatprep.mubr.msk.f32.mxu0 %vm132_vm3, %v569_v52 }
 0x62d   :  { %758 = vmatmul.mubr.msk.f32.vlgmr.msra.gmra.mrb[4].mxu0 %vm132_vm3, %v570_v63 }
 0x700   :  { %v759_v0 = vpop.f32.mrb[4].mxu0 }
 0x701   :  { %v643_v1 = vpop.f32.mrb[5].mxu0 }
 0x702   :  { %v652_v2 = vadd.f32 %v643_v1, %v936_v15 }
 0x704   :  { %v653_v3 = vadd.f32 %v759_v0, %v652_v2 }
 0x706   :  { %654 = vst.msk [vmem:[#allocation2] sm:$0xff] %vm132_vm3, %v653_v3 }
 0x707   :  { %847 = shalt.err (!%p844_p4)
}
 0x708   :  { %s848_s3 = scalar_lea.hbm %s1072_s7, 128 }
 0x709   :  { %p849_p5 = scmp.ne.s32.totalorder %s1072_s7, %s848_s3  ;;  %p852_p6 = scmp.lt.u32.totalorder %s848_s3, %s1072_s7 }
 0x70b   :  { %p854_p7 = pnand %p852_p6, %p849_p5 }
 0x70d   :  { %857 = shalt.err (!%p854_p7)
}
 0x70e   :  { %664 = dma.vmem_to_hbm [thread:$0]  %s662_s19, 128, %s1072_s7, [#allocation3]  }
 0x70f   :  { %858 = dma.done.wait [#allocation3], 128  }
 0x710   :  { %859 = vsyncadd [#allocation3], 4294967168 }
 0x711   :  { %668 = vsyncpa [#allocation3], 1 }

</bundles_post_ra>
